<compile_context>
chip_gen: v6e
topology: v6e:2x2x1
jax: 0.10.0
libtpu: 0.0.40
codegen_flags: <defaults>
</compile_context>

<pallas_src>
import jax
import jax.numpy as jnp
from jax import lax
from jax.experimental import pallas as pl
from jax.experimental.pallas import tpu as pltpu

_LANE = 128
_SUBLANE = 8


def _round_up(x, m):
    return ((x + m - 1) // m) * m


# ---------------------------------------------------------------------------
# Kernels
# ---------------------------------------------------------------------------
def _out1_kernel(h_ref, w_ref, b_ref, o_ref):
    # h_ref: [TN, in]  (VMEM)          -- TN rows of the (padded) flat batch
    # w_ref: [1, in]   (VMEM)          -- PyTorch-layout weight row, no transpose
    # b_ref: [1]       (SMEM scalar)
    # o_ref: [1, TN]   (VMEM)          -- lane-dense: batch on the lane axis
    # 1-row MXU matmul contracting the feature dims -> result is already
    # lane-dense (no cross-lane reduce / relayout needed).
    z = lax.dot_general(
        w_ref[...], h_ref[...],
        dimension_numbers=(((1,), (1,)), ((), ())),
        preferred_element_type=jnp.float32)            # [1, TN]
    o_ref[...] = jnp.maximum(z + b_ref[0], 0.0).astype(o_ref.dtype)


def _linear_relu_kernel(h_ref, wt_ref, b_ref, o_ref, acc_ref):
    # h_ref:  [tm, tk]   wt_ref: [tk, tn]   b_ref: [1, tn]
    # o_ref:  [tm, tn]   acc_ref: [tm, tn] f32 scratch (resident across K)
    k = pl.program_id(2)

    @pl.when(k == 0)
    def _init():
        acc_ref[...] = jnp.zeros_like(acc_ref)

    acc_ref[...] += jnp.dot(h_ref[...], wt_ref[...],
                            preferred_element_type=jnp.float32)

    @pl.when(k == pl.num_programs(2) - 1)
    def _finalize():
        z = acc_ref[...] + b_ref[...].astype(jnp.float32)
        o_ref[...] = jnp.maximum(z, 0.0).astype(o_ref.dtype)


# ---------------------------------------------------------------------------
# Dispatchers
# ---------------------------------------------------------------------------
def _forward_out1(h2d, w_row, b_vec, out_dtype):
    """out==1 fast path. h2d: [N, K], w_row: [1, K], b_vec: [1] -> [N]."""
    N, K = h2d.shape
    assert w_row.shape == (1, K) and b_vec.shape == (1,)

    n_pad = _round_up(N, _LANE)
    # Largest lane-tile that divides n_pad; >=512 wide tiles reach ~85% of the
    # HBM roofline, 128 is the floor. Caps VMEM at tn*K*4*2 per buffered input.
    tn = next(t for t in (512, 256, 128) if n_pad % t == 0)
    if n_pad != N:
        h2d = jnp.pad(h2d, ((0, n_pad - N), (0, 0)))

    grid = (n_pad // tn,)
    out = pl.pallas_call(
        _out1_kernel,
        out_shape=jax.ShapeDtypeStruct((1, n_pad), out_dtype),
        grid_spec=pltpu.PrefetchScalarGridSpec(
            num_scalar_prefetch=0,
            grid=grid,
            in_specs=[
                pl.BlockSpec((tn, K), lambda i: (i, 0)),                 # h tile
                pl.BlockSpec((1, K), lambda i: (0, 0)),                  # weight row
                pl.BlockSpec(memory_space=pltpu.MemorySpace.SMEM),       # bias scalar
            ],
            out_specs=pl.BlockSpec((1, tn), lambda i: (0, i)),
        ),
        compiler_params=pltpu.CompilerParams(
            dimension_semantics=("parallel",)),          # v7x: shard over 2 TCs
        cost_estimate=pl.CostEstimate(
            flops=2 * n_pad * K,
            transcendentals=0,
            bytes_accessed=(n_pad * K + K + 1 + n_pad) * 4),
    )(h2d, w_row, b_vec)
    return out[0, :N]                                   # drop lane padding


def _forward_general(h2d, wt, bias2d, out_dtype, use_bf16):
    """out>1 path. h2d: [M, K], wt: [K, N] (pre-transposed), bias2d: [1, N]."""
    M, K = h2d.shape
    Kw, N = wt.shape
    assert Kw == K and bias2d.shape == (1, N)

    if use_bf16 is None:
        # bf16 operands + f32 accumulator only "at scale" (negligible accuracy
        # loss for a linear+ReLU head; 2-4x MXU throughput on v5e/v6e/v7x).
        use_bf16 = bool(out_dtype == jnp.float32 and K >= 512 and N >= 128)

    # Tile sizes sized against v7x's 64 MiB physical / ~32 MiB scoped VMEM:
    # (2 inputs x 2 buffers x tile) + f32 acc + out tile stays < 4 MiB in f32.
    tm = min(256, _round_up(M, _SUBLANE))
    tn = min(256, _round_up(N, _LANE))
    tk = min(512, _round_up(K, _LANE))
    m_pad, n_pad, k_pad = _round_up(M, tm), _round_up(N, tn), _round_up(K, tk)

    if (m_pad, k_pad) != (M, K):
        h2d = jnp.pad(h2d, ((0, m_pad - M), (0, k_pad - K)))
    if (k_pad, n_pad) != (K, N):
        wt = jnp.pad(wt, ((0, k_pad - K), (0, n_pad - N)))
    if n_pad != N:
        bias2d = jnp.pad(bias2d, ((0, 0), (0, n_pad - N)))
    if use_bf16:
        h2d = h2d.astype(jnp.bfloat16)
        wt = wt.astype(jnp.bfloat16)

    grid = (m_pad // tm, n_pad // tn, k_pad // tk)
    bpe = 2 if use_bf16 else 4
    out = pl.pallas_call(
        _linear_relu_kernel,
        out_shape=jax.ShapeDtypeStruct((m_pad, n_pad), out_dtype),
        grid_spec=pltpu.PrefetchScalarGridSpec(
            num_scalar_prefetch=0,
            grid=grid,
            in_specs=[
                pl.BlockSpec((tm, tk), lambda i, j, k: (i, k)),   # h
                pl.BlockSpec((tk, tn), lambda i, j, k: (k, j)),   # W^T
                pl.BlockSpec((1, tn), lambda i, j, k: (0, j)),    # bias (2-D, lane-dense)
            ],
            out_specs=pl.BlockSpec((tm, tn), lambda i, j, k: (i, j)),
            scratch_shapes=[pltpu.VMEM((tm, tn), jnp.float32)],
        ),
        compiler_params=pltpu.CompilerParams(
            dimension_semantics=("parallel", "parallel", "arbitrary")),
        cost_estimate=pl.CostEstimate(
            flops=2 * m_pad * n_pad * k_pad,
            transcendentals=0,
            bytes_accessed=(m_pad * k_pad + k_pad * n_pad) * bpe
            + (m_pad * n_pad + n_pad) * 4),
    )(h2d, wt, bias2d)
    return out[:M, :N]


def _baseline_forward(h_t, weight, bias, use_bf16_matmul=None):
    """h_t: [..., in], weight: [out, in] (PyTorch layout), bias: [out]."""
    h_t = lax.stop_gradient(h_t)                 # mirrors h_t.detach()
    out_size, in_size = weight.shape
    assert h_t.shape[-1] == in_size
    out_dtype = jnp.result_type(h_t.dtype, weight.dtype, bias.dtype)

    lead = h_t.shape[:-1]
    h2d = h_t.reshape(-1, in_size).astype(out_dtype)

    if out_size == 1:
        flat = _forward_out1(h2d, weight.astype(out_dtype),
                             bias.astype(out_dtype), out_dtype)
        return flat.reshape(*lead, 1)

    # Per-call W^T (XLA op outside the kernel). For repeated calls use
    # make_baseline_network(), which caches W^T once at parameter load.
    wt = weight.astype(out_dtype).T
    bias2d = bias.astype(out_dtype).reshape(1, out_size)
    out2d = _forward_general(h2d, wt, bias2d, out_dtype, use_bf16_matmul)
    return out2d.reshape(*lead, out_size)


# ---------------------------------------------------------------------------
# Public API: differentiable functional form (custom VJP) + prepared closure
# ---------------------------------------------------------------------------
@jax.custom_vjp
def baseline_network(h_t, weight, bias):
    """BaselineNetwork forward: relu(detach(h_t) @ W^T + b)."""
    return _baseline_forward(h_t, weight, bias)


def _baseline_fwd(h_t, weight, bias):
    out = _baseline_forward(h_t, weight, bias)
    return out, (lax.stop_gradient(h_t), weight, bias, out)


def _baseline_bwd(res, g):
    # pallas_call is not differentiable; backward is trivial plain-JAX math.
    h, weight, bias, out = res
    dz = jnp.where(out > 0, g, jnp.zeros_like(g))
    dz2 = dz.reshape(-1, dz.shape[-1]).astype(jnp.float32)
    h2 = h.reshape(-1, h.shape[-1]).astype(jnp.float32)
    d_weight = (dz2.T @ h2).astype(weight.dtype)         # [out, in]
    d_bias = dz2.sum(axis=0).astype(bias.dtype)          # [out]
    d_h = jnp.zeros_like(h)                              # detach(): no grad to h
    return d_h, d_weight, d_bias


baseline_network.defvjp(_baseline_fwd, _baseline_bwd)


def make_baseline_network(weight, bias):
    """One-time parameter prep (caches W^T / [1,out] bias); returns a jitted
    forward closure so the transpose never sits on the per-call path."""
    out_size, in_size = weight.shape
    weight = jnp.asarray(weight)
    bias = jnp.asarray(bias)
    if out_size == 1:
        w_prep, b_prep = weight, bias                    # row layout, used directly
    else:
        w_prep = jnp.asarray(weight.T)                   # one-time W^T
        b_prep = bias.reshape(1, out_size)

    @jax.jit
    def forward(h_t):
        h_sg = lax.stop_gradient(h_t)
        out_dtype = jnp.result_type(h_sg.dtype, weight.dtype, bias.dtype)
        lead = h_sg.shape[:-1]
        h2d = h_sg.reshape(-1, in_size).astype(out_dtype)
        if out_size == 1:
            flat = _forward_out1(h2d, w_prep.astype(out_dtype),
                                 b_prep.astype(out_dtype), out_dtype)
            return flat.reshape(*lead, 1)
        out2d = _forward_general(h2d, w_prep.astype(out_dtype),
                                 b_prep.astype(out_dtype), out_dtype, None)
        return out2d.reshape(*lead, out_size)

    return forward


def baseline_network_ref(h_t, weight, bias):
    # Pure-JAX reference (detach() is a no-op for forward values).
    return jnp.maximum(h_t @ weight.T + bias, 0.0)


# ---------------------------------------------------------------------------
# Demo / correctness checks
# ---------------------------------------------------------------------------
if __name__ == "__main__":
    key = jax.random.PRNGKey(0)
    k1, k2, k3, k4, k5, k6, k7 = jax.random.split(key, 7)

    B, T, input_size = 8, 48, 32
    bound = 1.0 / (input_size ** 0.5)

    weight1 = jax.random.uniform(k2, (1, input_size),
                                 minval=-bound, maxval=bound, dtype=jnp.float32)
    bias1 = jax.random.uniform(k3, (1,),
                               minval=-bound, maxval=bound, dtype=jnp.float32)

    # (a) single timestep (original usage): [B, in] -> [B, 1]
    h_t = jax.random.normal(k1, (B, input_size), dtype=jnp.float32)
    b_t = baseline_network(h_t, weight1, bias1)
    jax.block_until_ready(b_t)
    assert b_t.shape == (B, 1)
    assert jnp.allclose(b_t, baseline_network_ref(h_t, weight1, bias1),
                        atol=1e-5, rtol=1e-5)

    # (b) batched over T timesteps in ONE call: [T, B, in] -> [T, B, 1]
    #     T*B = 384 rows -> lane-dense [1, 128] tiles, 3-point "parallel" grid.
    h_seq = jax.random.normal(k4, (T, B, input_size), dtype=jnp.float32)
    b_seq = baseline_network(h_seq, weight1, bias1)
    jax.block_until_ready(b_seq)
    ref_seq = baseline_network_ref(h_seq, weight1, bias1)
    assert b_seq.shape == (T, B, 1)
    assert jnp.allclose(b_seq, ref_seq, atol=1e-5, rtol=1e-5)

    # (c) parameter-prepared, jitted closure (one-time W^T / bias prep)
    fwd = make_baseline_network(weight1, bias1)
    b_seq2 = fwd(h_seq)
    jax.block_until_ready(b_seq2)
    assert jnp.allclose(b_seq2, ref_seq, atol=1e-5, rtol=1e-5)

    # (d) general path (out > 1): gridded, pipelined, f32-accumulated matmul
    out_size = 4
    weight4 = jax.random.uniform(k5, (out_size, input_size),
                                 minval=-bound, maxval=bound, dtype=jnp.float32)
    bias4 = jax.random.uniform(k6, (out_size,),
                               minval=-bound, maxval=bound, dtype=jnp.float32)
    h_g = jax.random.normal(k7, (37, input_size), dtype=jnp.float32)  # ragged M
    b_g = baseline_network(h_g, weight4, bias4)
    jax.block_until_ready(b_g)
    assert b_g.shape == (37, out_size)
    assert jnp.allclose(b_g, baseline_network_ref(h_g, weight4, bias4),
                        atol=1e-5, rtol=1e-5)

    # (e) bf16-operand / f32-accumulator variant of the general path
    b_g_bf16 = _baseline_forward(h_g, weight4, bias4, use_bf16_matmul=True)
    jax.block_until_ready(b_g_bf16)
    assert jnp.allclose(b_g_bf16, baseline_network_ref(h_g, weight4, bias4),
                        atol=5e-2, rtol=5e-2)

    # (f) gradients: weight/bias trained, h detached (custom VJP)
    def loss_kernel(w, b):
        return jnp.sum(baseline_network(h_seq, w, b))

    def loss_ref(w, b):
        return jnp.sum(jnp.maximum(lax.stop_gradient(h_seq) @ w.T + b, 0.0))

    gw, gb = jax.grad(loss_kernel, argnums=(0, 1))(weight1, bias1)
    gw_r, gb_r = jax.grad(loss_ref, argnums=(0, 1))(weight1, bias1)
    jax.block_until_ready((gw, gb))
    assert jnp.allclose(gw, gw_r, atol=1e-3, rtol=1e-4)
    assert jnp.allclose(gb, gb_r, atol=1e-3, rtol=1e-4)
    gh = jax.grad(lambda h: jnp.sum(baseline_network(h, weight1, bias1)))(h_seq)
    assert jnp.allclose(gh, jnp.zeros_like(h_seq))        # detach(): no grad to h

    # TODO(synk): for maximal perf this head should ultimately be fused into the
    # surrounding RNN/controller kernel rather than launched standalone.
    print("KERNEL_OK")
</pallas_src>

<mosaic_0001>
module attributes {stable_mosaic.version = 11 : i64} {
  func.func @_out1_kernel(%arg0: i32, %arg1: memref<128x32xf32, #tpu.memory_space<vmem>>, %arg2: memref<1x32xf32, #tpu.memory_space<vmem>>, %arg3: memref<1xf32, #tpu.memory_space<smem>>, %arg4: memref<1x128xf32, #tpu.memory_space<vmem>>) attributes {dimension_semantics = [#tpu.dimension_semantics<parallel>], iteration_bounds = array<i64: 1>, scalar_prefetch = 0 : i64, scratch_operands = 0 : i64, tpu.core_type = #tpu.core_type<tc>, window_params = [{transform_indices = @transform_0, window_bounds = array<i64: 128, 32>}, {pipeline_mode = #tpu.pipeline_mode<synchronous>, transform_indices = @transform_1, window_bounds = array<i64: 1, 32>}, {transform_indices = @transform_2, window_bounds = array<i64: 1>}, {transform_indices = @transform_3, window_bounds = array<i64: 1, 128>}]} {
    %c0 = arith.constant 0 : index
    %c0_0 = arith.constant 0 : index
    %0 = vector.load %arg2[%c0, %c0_0] : memref<1x32xf32, #tpu.memory_space<vmem>>, vector<1x32xf32>
    %c0_1 = arith.constant 0 : index
    %c0_2 = arith.constant 0 : index
    %1 = vector.load %arg1[%c0_1, %c0_2] : memref<128x32xf32, #tpu.memory_space<vmem>>, vector<128x32xf32>
    %cst = arith.constant dense<0.000000e+00> : vector<1x128xf32>
    %2 = tpu.matmul %0, %1, %cst {dimension_numbers = #tpu.dot_dimension_numbers<[1], [1], [0], [0], [0, 0, 1, 0], [], []>} : vector<1x32xf32>, vector<128x32xf32>, vector<1x128xf32> -> vector<1x128xf32>
    %c0_3 = arith.constant 0 : index
    %3 = memref.load %arg3[%c0_3] : memref<1xf32, #tpu.memory_space<smem>>
    %4 = vector.broadcast %3 : f32 to vector<1x128xf32>
    %5 = arith.addf %2, %4 : vector<1x128xf32>
    %cst_4 = arith.constant 0.000000e+00 : f32
    %6 = vector.broadcast %cst_4 : f32 to vector<1x128xf32>
    %7 = arith.maximumf %5, %6 : vector<1x128xf32>
    %c0_5 = arith.constant 0 : index
    %c0_6 = arith.constant 0 : index
    %8 = vector.load %arg4[%c0_5, %c0_6] : memref<1x128xf32, #tpu.memory_space<vmem>>, vector<1x128xf32>
    tpu.vector_store %arg4[%c0_5, %c0_6], %7 {strides = array<i32>} : memref<1x128xf32, #tpu.memory_space<vmem>>, vector<1x128xf32>,
    return
  }
  func.func @transform_0(%arg0: i32) -> (i32, i32) {
    %c0_i32 = arith.constant 0 : i32
    %c0_i32_0 = arith.constant 0 : i32
    return %arg0, %c0_i32 : i32, i32
  }
  func.func @transform_1(%arg0: i32) -> (i32, i32) {
    %c0_i32 = arith.constant 0 : i32
    %c0_i32_0 = arith.constant 0 : i32
    %c0_i32_1 = arith.constant 0 : i32
    return %c0_i32, %c0_i32_0 : i32, i32
  }
  func.func @transform_2(%arg0: i32) -> i32 {
    %c0_i32 = arith.constant 0 : i32
    %c0_i32_0 = arith.constant 0 : i32
    return %c0_i32 : i32
  }
  func.func @transform_3(%arg0: i32) -> (i32, i32) {
    %c0_i32 = arith.constant 0 : i32
    %c0_i32_0 = arith.constant 0 : i32
    return %c0_i32, %arg0 : i32, i32
  }
}

</mosaic_0001>

<bundles_post_ra>
// kernel: tpu_custom_call.1
= control target key start
LH: loop header
LB: loop body
LE: loop exit
PB: predicated region body
PF: predicated region fallthrough
CT: control target
= control target key end

     0   :  { %vm35_vm0 = vcmask 261120   ;;  %v267_v1 = vmov 0.0   ;;  %vm268_vm1 = vmmov 0   ;;  %s364_s0 = inlined_call_operand.vmem [shape: f32[128,32], index: 0, kind: input, shape index: {}]   ;;  %s365_s1 = inlined_call_operand.vmem [shape: f32[1,32], index: 1, kind: input, shape index: {}]   ;;  %s366_s2 = inlined_call_operand.<no memory space> [shape: f32[1], index: 2, kind: input, shape index: {}]   ;;  %s367_s3 = inlined_call_operand.hbm [shape: f32[1,128], index: 3, kind: output, shape index: {}]  }
   0x1   :  { %v32_v0 = vld [vmem:[%s364_s0 + $0x78] sm:$0xff]  ;;  %207 = vmatprep.subr.mxu0 %v267_v1  ;;  %239 = vmatprep.mubr.msk.f32.mxu0 %vm268_vm1, %v267_v1  ;;  %v31_v2 = vld [vmem:[%s364_s0 + $0x70] sm:$0xff] }
   0x2   :  { %208 = vmatpush3.xpose.msk.msra.mxu0 %vm35_vm0, %v32_v0 }
   0x3   :  { %209 = vmatprep.subr.mxu0 %v267_v1 }
   0x4   :  { %9 = vsyncpa [#allocation4], 0  ;;  %v30_v3 = vld [vmem:[%s364_s0 + $0x68] sm:$0xff]  ;;  %v29_v4 = vld [vmem:[%s364_s0 + $0x60] sm:$0xff]  ;;  %v34_v18 = vstv %s366_s2  ;;  %s269_s21 = smov [#allocation3]  }
   0x5   :  { %v28_v5 = vld [vmem:[%s364_s0 + $0x58] sm:$0xff]  ;;  %v27_v6 = vld [vmem:[%s364_s0 + $0x50] sm:$0xff]  ;;  %v26_v7 = vld [vmem:[%s364_s0 + $0x48] sm:$0xff]  ;;  %s165_s22 = sshll.u32 %s269_s21, 4  ;;  %s166_s22 = int_to_ptr.vmem [resolvable:$true] %s165_s22 }
   0x6   :  { %210 = vmatpush3.xpose.msk.msra.mxu0 %vm35_vm0, %v31_v2  ;;  %v25_v8 = vld [vmem:[%s364_s0 + $0x40] sm:$0xff]  ;;  %v24_v9 = vld [vmem:[%s364_s0 + $0x38] sm:$0xff]  ;;  %v23_v10 = vld [vmem:[%s364_s0 + $0x30] sm:$0xff]  ;;  %s249_s23 = scalar_lea.vmem %s166_s22, 32  ;;  %p250_p1 = scmp.lt.s32.totalorder %s166_s22, %s166_s22 }
   0x7   :  { %211 = vmatprep.subr.mxu0 %v267_v1  ;;  %v22_v11 = vld [vmem:[%s364_s0 + $0x28] sm:$0xff]  ;;  %v21_v12 = vld [vmem:[%s364_s0 + $0x20] sm:$0xff]  ;;  %v20_v13 = vld [vmem:[%s364_s0 + $0x18] sm:$0xff] }
   0x8   :  { %v19_v14 = vld [vmem:[%s364_s0 + $0x10] sm:$0xff]  ;;  %v18_v15 = vld [vmem:[%s364_s0 + $0x8] sm:$0xff]  ;;  %v17_v16 = vld [vmem:[%s364_s0] sm:$0xff]  ;;  %s245_s0 = scalar_lea.vmem %s166_s22, 16 }
   0x9   :  { %v16_v17 = vld [vmem:[%s365_s1] sm:$0x1]  ;;  %p246_p0 = scmp.ne.s32.totalorder %s166_s22, %s245_s0  ;;  %p251_p2 = scmp.lt.s32.totalorder %s249_s23, %s245_s0 }
   0xa   :  { %212 = vmatpush3.xpose.msk.msra.mxu0 %vm35_vm0, %v30_v3 }
   0xb   :  { %213 = vmatprep.subr.mxu0 %v267_v1  ;;  %p252_p3 = por %p251_p2, %p250_p1 }
   0xd   :  { %p253_p4 = pnand %p252_p3, %p246_p0 }
   0xe   :  { %214 = vmatpush3.xpose.msk.msra.mxu0 %vm35_vm0, %v29_v4 }
   0xf   :  { %215 = vmatprep.subr.mxu0 %v267_v1 }
  0x12   :  { %216 = vmatpush3.xpose.msk.msra.mxu0 %vm35_vm0, %v28_v5 }
  0x13   :  { %217 = vmatprep.subr.mxu0 %v267_v1 }
  0x16   :  { %218 = vmatpush3.xpose.msk.msra.mxu0 %vm35_vm0, %v27_v6 }
  0x17   :  { %219 = vmatprep.subr.mxu0 %v267_v1 }
  0x1a   :  { %220 = vmatpush3.xpose.msk.msra.mxu0 %vm35_vm0, %v26_v7 }
  0x1b   :  { %221 = vmatprep.subr.mxu0 %v267_v1 }
  0x1e   :  { %222 = vmatpush3.xpose.msk.msra.mxu0 %vm35_vm0, %v25_v8 }
  0x1f   :  { %223 = vmatprep.subr.mxu0 %v267_v1 }
  0x22   :  { %224 = vmatpush3.xpose.msk.msra.mxu0 %vm35_vm0, %v24_v9 }
  0x23   :  { %225 = vmatprep.subr.mxu0 %v267_v1 }
  0x26   :  { %226 = vmatpush3.xpose.msk.msra.mxu0 %vm35_vm0, %v23_v10 }
  0x27   :  { %227 = vmatprep.subr.mxu0 %v267_v1 }
  0x2a   :  { %228 = vmatpush3.xpose.msk.msra.mxu0 %vm35_vm0, %v22_v11 }
  0x2b   :  { %229 = vmatprep.subr.mxu0 %v267_v1 }
  0x2e   :  { %230 = vmatpush3.xpose.msk.msra.mxu0 %vm35_vm0, %v21_v12 }
  0x2f   :  { %231 = vmatprep.subr.mxu0 %v267_v1 }
  0x32   :  { %232 = vmatpush3.xpose.msk.msra.mxu0 %vm35_vm0, %v20_v13 }
  0x33   :  { %233 = vmatprep.subr.mxu0 %v267_v1 }
  0x36   :  { %234 = vmatpush3.xpose.msk.msra.mxu0 %vm35_vm0, %v19_v14 }
  0x37   :  { %235 = vmatprep.subr.mxu0 %v267_v1 }
  0x3a   :  { %236 = vmatpush3.xpose.msk.msra.mxu0 %vm35_vm0, %v18_v15 }
  0x3b   :  { %237 = vmatprep.subr.mxu0 %v267_v1 }
  0x3e   :  { %238 = vmatpush3.xpose.msk.msra.mxu0 %vm35_vm0, %v17_v16 }
  0x41   :  { %240 = vmatmul.mubr.msk.f32.vlgmr.msra.gmra.mxu0 %vm35_vm0, %v16_v17 }
 0x101   :  { %v153_v19 = vpop.f32.mrf.mxu0 }
 0x102   :  { %v154_v20 = vadd.f32 %v153_v19, %v34_v18 }
 0x103   :  { %v241_v21 = vpop.f32.mrf.mxu0 }
 0x104   :  { %v157_v22 = vmax.f32 %v154_v20, 0.0 }
 0x106   :  { %158 = vst [vmem:[#allocation3] sm:$0x1] %v157_v22 }
 0x107   :  { %256 = shalt.err (!%p253_p4)
}
 0x108   :  { %168 = dma.vmem_to_hbm [thread:$0]  %s166_s22, 16, %s367_s3, [#allocation4]  }
 0x109   :  { %265 = dma.done.wait [#allocation4], 16  }
 0x10a   :  { %266 = vsyncadd [#allocation4], 4294967280 }
 0x10b   :  { %172 = vsyncpa [#allocation4], 1 }

</bundles_post_ra>
